<compile_context>
chip_gen: v7x
topology: tpu7x:2x2x1
jax: 0.10.0
libtpu: 0.0.40
codegen_flags: <defaults>
</compile_context>

<pallas_src>
import functools

import jax
import jax.numpy as jnp
from jax import lax
from jax.experimental import pallas as pl
from jax.experimental.pallas import tpu as pltpu

NUM_EMBEDDINGS = 64     # K
EMBEDDING_DIM = 32      # encoder.z_dim == embedding_dim
COMMITMENT_COST = 0.25


def _round_up(x, m):
    return ((x + m - 1) // m) * m


def _vqvae_kernel(x_ref, w_enc_ref, b_enc_ref, emb_n2_ref, e_sq_ref,
                  emb_t_ref, e_dec_ref, b_dec_ref,
                  recon_ref, stats_ref, *, total_p):
    i = pl.program_id(0)
    n = pl.num_programs(0)

    x = x_ref[...]                               # (C, tp)  pixels on lanes
    tp = x.shape[1]
    K = e_sq_ref.shape[0]

    # ---- encoder: 1x1 conv == per-pixel linear + ReLU -----------------------
    # TODO(synk): encoder/decoder are external modules in the original model;
    # they are synthesized here as 1x1-conv (per-pixel linear) stand-ins.
    z = jnp.dot(w_enc_ref[...], x, preferred_element_type=jnp.float32)
    z = jnp.maximum(z + b_enc_ref[...], 0.0)                      # (D, tp) f32

    # ---- VectorQuantizer: code selection -------------------------------------
    # argmin_k ||z - e_k||^2 == argmin_k (||e_k||^2 - 2 e_k.z); the per-pixel
    # ||z||^2 term is argmin-invariant and dropped.  (-2*emb) is pre-cast to
    # bf16 in the wrapper; the bf16 MXU score only affects code selection.
    score = e_sq_ref[...] + jnp.dot(emb_n2_ref[...], z.astype(jnp.bfloat16),
                                    preferred_element_type=jnp.float32)  # (K, tp)

    iota_k = lax.broadcasted_iota(jnp.int32, score.shape, 0)
    min_s = jnp.min(score, axis=0, keepdims=True)                 # (1, tp)
    min_idx = jnp.min(jnp.where(score <= min_s, iota_k, K),
                      axis=0, keepdims=True)                      # first-index tie-break
    encodings = (iota_k == min_idx).astype(jnp.float32)           # (K, tp) one-hot

    # exact-f32 codebook lookup (for the loss); decoder output hangs off
    # `encodings` directly via e_dec = emb @ w_dec (precomputed in wrapper).
    quantized = jnp.dot(emb_t_ref[...], encodings,
                        preferred_element_type=jnp.float32)       # (D, tp)

    # straight-through estimator: forward value of the decoder input == quantized.
    # TODO(synk): (1+beta)*MSE and straight-through only match the *forward*;
    # this kernel is not reusable under autodiff (stop_gradient grads differ).
    recon_ref[...] = (jnp.dot(e_dec_ref[...], encodings,
                              preferred_element_type=jnp.float32)
                      + b_dec_ref[...])                           # (C, tp)

    # ---- per-tile partial statistics (independent per grid step) -------------
    ssq = jnp.sum((quantized - z) ** 2, axis=0, keepdims=True)    # (1, tp)

    def write_stats(weights):        # weights: (1, tp), 1.0 valid / 0.0 padded
        counts = lax.dot_general(weights, encodings,
                                 (((1,), (1,)), ((), ())),
                                 preferred_element_type=jnp.float32)   # (1, K)
        sse = jnp.sum(ssq * weights, axis=1, keepdims=True)            # (1, 1)
        stats_ref[...] = jnp.zeros((1, 128), jnp.float32) + sse        # lanes K..127 = sse
        stats_ref[:, :K] = counts                                      # lanes 0..K-1 = counts

    rem = total_p % tp   # static
    if rem == 0:
        write_stats(jnp.ones((1, tp), jnp.float32))
    else:
        @pl.when(i < n - 1)
        def _full_tile():
            write_stats(jnp.ones((1, tp), jnp.float32))

        @pl.when(i == n - 1)
        def _last_tile():
            lane = lax.broadcasted_iota(jnp.int32, (1, tp), 1)
            write_stats((lane < rem).astype(jnp.float32))


def vqvae_forward(x_nchw, params, *, tile_p=4096):
    w_enc, b_enc, emb, w_dec, b_dec = params
    N, C, H, W = x_nchw.shape
    K, D = emb.shape
    assert K < 128, "stats layout packs counts + sse into one 128-lane row"
    P = N * H * W

    # lane-dense tiles: multiple of 128, capped by (rounded-up) P
    tile_p = max(128, min(_round_up(tile_p, 128), _round_up(P, 128)))
    G = pl.cdiv(P, tile_p)
    P_pad = G * tile_p

    # NCHW -> (C, P): pixels on the lane axis; zero-pad to whole tiles.
    x_t = jnp.transpose(x_nchw, (1, 0, 2, 3)).reshape(C, P)
    if P_pad != P:
        x_t = jnp.pad(x_t, ((0, 0), (0, P_pad - P)))

    # loop-invariant precompute (hoisted out of the kernel, stays resident)
    w_enc_t = jnp.transpose(w_enc)                       # (D, C)
    b_enc_t = jnp.reshape(b_enc, (D, 1))                 # (D, 1)
    emb_n2 = (-2.0 * emb).astype(jnp.bfloat16)           # (K, D) bf16 (score only)
    e_sq = jnp.sum(emb * emb, axis=1, keepdims=True)     # (K, 1)  ||e_k||^2
    emb_t = jnp.transpose(emb)                           # (D, K)  exact codebook
    e_dec = jnp.transpose(emb @ w_dec)                   # (C, K)  fused codebook->decoder
    b_dec_t = jnp.reshape(b_dec, (C, 1))                 # (C, 1)

    kernel = functools.partial(_vqvae_kernel, total_p=P)

    def resident(a):
        return pl.BlockSpec(a.shape, lambda i: (0, 0))

    recon_t, stats = pl.pallas_call(
        kernel,
        out_shape=(
            jax.ShapeDtypeStruct((C, P_pad), jnp.float32),    # recon (channels x pixels)
            jax.ShapeDtypeStruct((1, 128 * G), jnp.float32),  # per-tile partial stats
        ),
        grid=(G,),
        in_specs=[
            pl.BlockSpec((C, tile_p), lambda i: (0, i)),      # x: streamed lane-dense tiles
            resident(w_enc_t), resident(b_enc_t), resident(emb_n2),
            resident(e_sq), resident(emb_t), resident(e_dec), resident(b_dec_t),
        ],
        out_specs=(
            pl.BlockSpec((C, tile_p), lambda i: (0, i)),      # recon: lane-dense stores
            pl.BlockSpec((1, 128), lambda i: (0, i)),         # one stats row per tile
        ),
        compiler_params=pltpu.CompilerParams(
            dimension_semantics=("parallel",),                # tiles independent (v7x 2 TCs)
            vmem_limit_bytes=32 * 1024 * 1024,
        ),
    )(x_t, w_enc_t, b_enc_t, emb_n2, e_sq, emb_t, e_dec, b_dec_t)

    # reduce the tiny per-tile partials -> vq_loss / perplexity (plain XLA)
    stats = stats.reshape(G, 128)
    counts = jnp.sum(stats[:, :K], axis=0)                    # (K,) per-code usage
    sse = jnp.sum(stats[:, K])                                # total squared error
    mse = sse / float(P * D)
    vq_loss = (1.0 + COMMITMENT_COST) * mse                   # q_latent + beta * e_latent (forward)
    avg = counts / float(P)
    perplexity = jnp.exp(-jnp.sum(avg * jnp.log(avg + 1e-10)))

    x_recon = jnp.transpose(recon_t[:, :P].reshape(C, N, H, W), (1, 0, 2, 3))
    return vq_loss, x_recon, perplexity


def vqvae_reference(x_nchw, params):
    """Pure-JAX reference (same bf16 score math for code selection as the kernel)."""
    w_enc, b_enc, emb, w_dec, b_dec = params
    N, C, H, W = x_nchw.shape
    x = jnp.transpose(x_nchw, (0, 2, 3, 1)).reshape(-1, C)
    z = jnp.maximum(x @ w_enc + b_enc, 0.0)
    emb_n2 = (-2.0 * emb).astype(jnp.bfloat16)
    score = jnp.sum(emb * emb, axis=1)[None, :] + jnp.dot(
        z.astype(jnp.bfloat16), emb_n2.T, preferred_element_type=jnp.float32)
    idx = jnp.argmin(score, axis=1)
    enc = jax.nn.one_hot(idx, emb.shape[0], dtype=jnp.float32)
    quant = enc @ emb
    mse = jnp.mean((quant - z) ** 2)
    loss = (1.0 + COMMITMENT_COST) * mse
    avg = jnp.mean(enc, axis=0)
    perp = jnp.exp(-jnp.sum(avg * jnp.log(avg + 1e-10)))
    recon = quant @ w_dec + b_dec
    recon = jnp.transpose(recon.reshape(N, H, W, C), (0, 3, 1, 2))
    return loss, recon, perp


if __name__ == "__main__":
    key = jax.random.PRNGKey(0)
    k1, k2, k3, kx = jax.random.split(key, 4)

    N, C, H, W = 2, 4, 16, 16
    D, K = EMBEDDING_DIM, NUM_EMBEDDINGS

    w_enc = jax.random.normal(k1, (C, D), jnp.float32) * 0.1
    b_enc = jnp.zeros((1, D), jnp.float32)
    emb = jax.random.uniform(k2, (K, D), jnp.float32,
                             minval=-1.0 / K, maxval=1.0 / K)
    w_dec = jax.random.normal(k3, (D, C), jnp.float32) * 0.1
    b_dec = jnp.zeros((1, C), jnp.float32)
    params = (w_enc, b_enc, emb, w_dec, b_dec)

    x = jax.random.normal(kx, (N, C, H, W), jnp.float32)

    # small tile for the demo so the multi-step grid, per-tile partial stats
    # and last-tile masking are all exercised:
    # P = 512, tile_p = 384 -> 2 grid steps, 256 padded pixels in the last tile
    fwd = jax.jit(functools.partial(vqvae_forward, tile_p=384))
    vq_loss, x_recon, perplexity = jax.block_until_ready(fwd(x, params))

    assert x_recon.shape == (N, C, H, W)
    assert vq_loss.shape == () and perplexity.shape == ()
    assert bool(jnp.all(jnp.isfinite(x_recon)))

    # loose validation vs. pure-JAX reference (tolerant of rare argmin flips
    # caused by differing accumulation order between MXU and XLA matmul paths)
    ref_loss, ref_recon, ref_perp = jax.jit(vqvae_reference)(x, params)
    frac_close = float(jnp.mean(
        (jnp.abs(x_recon - ref_recon)
         <= 1e-3 + 1e-2 * jnp.abs(ref_recon)).astype(jnp.float32)))
    assert frac_close > 0.97, frac_close
    assert abs(float(vq_loss) - float(ref_loss)) <= 0.05 * abs(float(ref_loss)) + 1e-6
    assert abs(float(perplexity) - float(ref_perp)) <= 0.05 * abs(float(ref_perp)) + 1e-6

    print("KERNEL_OK")
</pallas_src>

<mosaic_0001>
module attributes {stable_mosaic.version = 11 : i64} {
  func.func @_vqvae_kernel(%arg0: i32, %arg1: memref<4x384xf32, #tpu.memory_space<vmem>>, %arg2: memref<32x4xf32, #tpu.memory_space<vmem>>, %arg3: memref<32x1xf32, #tpu.memory_space<vmem>>, %arg4: memref<64x32xbf16, #tpu.memory_space<vmem>>, %arg5: memref<64x1xf32, #tpu.memory_space<vmem>>, %arg6: memref<32x64xf32, #tpu.memory_space<vmem>>, %arg7: memref<4x64xf32, #tpu.memory_space<vmem>>, %arg8: memref<4x1xf32, #tpu.memory_space<vmem>>, %arg9: memref<4x384xf32, #tpu.memory_space<vmem>>, %arg10: memref<1x128xf32, #tpu.memory_space<vmem>>) attributes {dimension_semantics = [#tpu.dimension_semantics<parallel>], iteration_bounds = array<i64: 2>, scalar_prefetch = 0 : i64, scratch_operands = 0 : i64, tpu.core_type = #tpu.core_type<tc>, window_params = [{transform_indices = @transform_0, window_bounds = array<i64: 4, 384>}, {pipeline_mode = #tpu.pipeline_mode<synchronous>, transform_indices = @transform_1, window_bounds = array<i64: 32, 4>}, {pipeline_mode = #tpu.pipeline_mode<synchronous>, transform_indices = @transform_2, window_bounds = array<i64: 32, 1>}, {pipeline_mode = #tpu.pipeline_mode<synchronous>, transform_indices = @transform_3, window_bounds = array<i64: 64, 32>}, {pipeline_mode = #tpu.pipeline_mode<synchronous>, transform_indices = @transform_4, window_bounds = array<i64: 64, 1>}, {pipeline_mode = #tpu.pipeline_mode<synchronous>, transform_indices = @transform_5, window_bounds = array<i64: 32, 64>}, {pipeline_mode = #tpu.pipeline_mode<synchronous>, transform_indices = @transform_6, window_bounds = array<i64: 4, 64>}, {pipeline_mode = #tpu.pipeline_mode<synchronous>, transform_indices = @transform_7, window_bounds = array<i64: 4, 1>}, {transform_indices = @transform_8, window_bounds = array<i64: 4, 384>}, {transform_indices = @transform_9, window_bounds = array<i64: 1, 128>}]} {
    %c0 = arith.constant 0 : index
    %c0_0 = arith.constant 0 : index
    %0 = vector.load %arg1[%c0, %c0_0] : memref<4x384xf32, #tpu.memory_space<vmem>>, vector<4x384xf32>
    %c0_1 = arith.constant 0 : index
    %c0_2 = arith.constant 0 : index
    %1 = vector.load %arg2[%c0_1, %c0_2] : memref<32x4xf32, #tpu.memory_space<vmem>>, vector<32x4xf32>
    %cst = arith.constant dense<0.000000e+00> : vector<32x384xf32>
    %2 = tpu.matmul %1, %0, %cst {dimension_numbers = #tpu.dot_dimension_numbers<[1], [0], [0], [1], [0, 0, 1, 1], [], []>} : vector<32x4xf32>, vector<4x384xf32>, vector<32x384xf32> -> vector<32x384xf32>
    %c0_3 = arith.constant 0 : index
    %c0_4 = arith.constant 0 : index
    %3 = vector.load %arg3[%c0_3, %c0_4] : memref<32x1xf32, #tpu.memory_space<vmem>>, vector<32x1xf32>
    %4 = vector.broadcast %3 : vector<32x1xf32> to vector<32x384xf32>
    %5 = arith.addf %2, %4 : vector<32x384xf32>
    %cst_5 = arith.constant 0.000000e+00 : f32
    %6 = vector.broadcast %cst_5 : f32 to vector<32x384xf32>
    %7 = arith.maximumf %5, %6 : vector<32x384xf32>
    %c0_6 = arith.constant 0 : index
    %c0_7 = arith.constant 0 : index
    %8 = vector.load %arg5[%c0_6, %c0_7] : memref<64x1xf32, #tpu.memory_space<vmem>>, vector<64x1xf32>
    %c0_8 = arith.constant 0 : index
    %c0_9 = arith.constant 0 : index
    %9 = vector.load %arg4[%c0_8, %c0_9] : memref<64x32xbf16, #tpu.memory_space<vmem>>, vector<64x32xbf16>
    %10 = arith.truncf %7 : vector<32x384xf32> to vector<32x384xbf16>
    %cst_10 = arith.constant dense<0.000000e+00> : vector<64x384xf32>
    %11 = tpu.matmul %9, %10, %cst_10 {dimension_numbers = #tpu.dot_dimension_numbers<[1], [0], [0], [1], [0, 0, 1, 1], [], []>} : vector<64x32xbf16>, vector<32x384xbf16>, vector<64x384xf32> -> vector<64x384xf32>
    %12 = vector.broadcast %8 : vector<64x1xf32> to vector<64x384xf32>
    %13 = arith.addf %12, %11 : vector<64x384xf32>
    %14 = tpu.iota {dimensions = array<i32: 0>} : vector<64x384xi32>
    %cst_11 = arith.constant dense<0x7F800000> : vector<384xf32>
    %15 = vector.multi_reduction <minimumf>, %13, %cst_11 [0] : vector<64x384xf32> to vector<384xf32>
    %16 = vector.shape_cast %15 : vector<384xf32> to vector<1x384xf32>
    %17 = vector.broadcast %16 : vector<1x384xf32> to vector<64x384xf32>
    %18 = arith.cmpf ole, %13, %17 : vector<64x384xf32>
    %c64_i32 = arith.constant 64 : i32
    %19 = vector.broadcast %c64_i32 : i32 to vector<64x384xi32>
    %20 = arith.select %18, %14, %19 : vector<64x384xi1>, vector<64x384xi32>
    %cst_12 = arith.constant dense<2147483647> : vector<384xi32>
    %21 = vector.multi_reduction <minsi>, %20, %cst_12 [0] : vector<64x384xi32> to vector<384xi32>
    %22 = vector.shape_cast %21 : vector<384xi32> to vector<1x384xi32>
    %23 = vector.broadcast %22 : vector<1x384xi32> to vector<64x384xi32>
    %24 = arith.cmpi eq, %14, %23 : vector<64x384xi32>
    %25 = arith.extui %24 : vector<64x384xi1> to vector<64x384xi32>
    %26 = arith.sitofp %25 : vector<64x384xi32> to vector<64x384xf32>
    %c0_13 = arith.constant 0 : index
    %c0_14 = arith.constant 0 : index
    %27 = vector.load %arg6[%c0_13, %c0_14] : memref<32x64xf32, #tpu.memory_space<vmem>>, vector<32x64xf32>
    %cst_15 = arith.constant dense<0.000000e+00> : vector<32x384xf32>
    %28 = tpu.matmul %27, %26, %cst_15 {dimension_numbers = #tpu.dot_dimension_numbers<[1], [0], [0], [1], [0, 0, 1, 1], [], []>} : vector<32x64xf32>, vector<64x384xf32>, vector<32x384xf32> -> vector<32x384xf32>
    %c0_16 = arith.constant 0 : index
    %c0_17 = arith.constant 0 : index
    %29 = vector.load %arg7[%c0_16, %c0_17] : memref<4x64xf32, #tpu.memory_space<vmem>>, vector<4x64xf32>
    %cst_18 = arith.constant dense<0.000000e+00> : vector<4x384xf32>
    %30 = tpu.matmul %29, %26, %cst_18 {dimension_numbers = #tpu.dot_dimension_numbers<[1], [0], [0], [1], [0, 0, 1, 1], [], []>} : vector<4x64xf32>, vector<64x384xf32>, vector<4x384xf32> -> vector<4x384xf32>
    %c0_19 = arith.constant 0 : index
    %c0_20 = arith.constant 0 : index
    %31 = vector.load %arg8[%c0_19, %c0_20] : memref<4x1xf32, #tpu.memory_space<vmem>>, vector<4x1xf32>
    %32 = vector.broadcast %31 : vector<4x1xf32> to vector<4x384xf32>
    %33 = arith.addf %30, %32 : vector<4x384xf32>
    %c0_21 = arith.constant 0 : index
    %c0_22 = arith.constant 0 : index
    %34 = vector.load %arg9[%c0_21, %c0_22] : memref<4x384xf32, #tpu.memory_space<vmem>>, vector<4x384xf32>
    tpu.vector_store %arg9[%c0_21, %c0_22], %33 {strides = array<i32>} : memref<4x384xf32, #tpu.memory_space<vmem>>, vector<4x384xf32>,
    %35 = arith.subf %28, %7 : vector<32x384xf32>
    %36 = arith.mulf %35, %35 : vector<32x384xf32>
    %cst_23 = arith.constant dense<0.000000e+00> : vector<384xf32>
    %37 = vector.multi_reduction <add>, %36, %cst_23 [0] : vector<32x384xf32> to vector<384xf32>
    %38 = vector.shape_cast %37 : vector<384xf32> to vector<1x384xf32>
    %c1_i32 = arith.constant 1 : i32
    %39 = arith.cmpi slt, %arg0, %c1_i32 : i32
    %40 = arith.extui %39 : i1 to i32
    %c0_i32 = arith.constant 0 : i32
    %41 = arith.cmpi ne, %40, %c0_i32 : i32
    scf.if %41 {
      %cst_26 = arith.constant 1.000000e+00 : f32
      %45 = vector.broadcast %cst_26 : f32 to vector<1x384xf32>
      %cst_27 = arith.constant dense<0.000000e+00> : vector<1x64xf32>
      %46 = tpu.matmul %45, %26, %cst_27 {dimension_numbers = #tpu.dot_dimension_numbers<[1], [1], [0], [0], [0, 0, 1, 0], [], []>} : vector<1x384xf32>, vector<64x384xf32>, vector<1x64xf32> -> vector<1x64xf32>
      %47 = arith.mulf %38, %45 : vector<1x384xf32>
      %cst_28 = arith.constant dense<0.000000e+00> : vector<1xf32>
      %48 = vector.multi_reduction <add>, %47, %cst_28 [1] : vector<1x384xf32> to vector<1xf32>
      %49 = vector.shape_cast %48 : vector<1xf32> to vector<1x1xf32>
      %cst_29 = arith.constant 0.000000e+00 : f32
      %50 = vector.broadcast %cst_29 : f32 to vector<1x128xf32>
      %51 = vector.broadcast %49 : vector<1x1xf32> to vector<1x128xf32>
      %52 = arith.addf %50, %51 : vector<1x128xf32>
      %c0_30 = arith.constant 0 : index
      %c0_31 = arith.constant 0 : index
      %53 = vector.load %arg10[%c0_30, %c0_31] : memref<1x128xf32, #tpu.memory_space<vmem>>, vector<1x128xf32>
      tpu.vector_store %arg10[%c0_30, %c0_31], %52 {strides = array<i32>} : memref<1x128xf32, #tpu.memory_space<vmem>>, vector<1x128xf32>,
      %c0_32 = arith.constant 0 : index
      %c0_33 = arith.constant 0 : index
      %54 = vector.load %arg10[%c0_32, %c0_33] : memref<1x128xf32, #tpu.memory_space<vmem>>, vector<1x64xf32>
      tpu.vector_store %arg10[%c0_32, %c0_33], %46 {strides = array<i32>} : memref<1x128xf32, #tpu.memory_space<vmem>>, vector<1x64xf32>,
    } else {
    }
    %c1_i32_24 = arith.constant 1 : i32
    %42 = arith.cmpi eq, %arg0, %c1_i32_24 : i32
    %43 = arith.extui %42 : i1 to i32
    %c0_i32_25 = arith.constant 0 : i32
    %44 = arith.cmpi ne, %43, %c0_i32_25 : i32
    scf.if %44 {
      %45 = tpu.iota {dimensions = array<i32: 1>} : vector<1x384xi32>
      %c128_i32 = arith.constant 128 : i32
      %46 = vector.broadcast %c128_i32 : i32 to vector<1x384xi32>
      %47 = arith.cmpi slt, %45, %46 : vector<1x384xi32>
      %48 = arith.extui %47 : vector<1x384xi1> to vector<1x384xi32>
      %49 = arith.sitofp %48 : vector<1x384xi32> to vector<1x384xf32>
      %cst_26 = arith.constant dense<0.000000e+00> : vector<1x64xf32>
      %50 = tpu.matmul %49, %26, %cst_26 {dimension_numbers = #tpu.dot_dimension_numbers<[1], [1], [0], [0], [0, 0, 1, 0], [], []>} : vector<1x384xf32>, vector<64x384xf32>, vector<1x64xf32> -> vector<1x64xf32>
      %51 = arith.mulf %38, %49 : vector<1x384xf32>
      %cst_27 = arith.constant dense<0.000000e+00> : vector<1xf32>
      %52 = vector.multi_reduction <add>, %51, %cst_27 [1] : vector<1x384xf32> to vector<1xf32>
      %53 = vector.shape_cast %52 : vector<1xf32> to vector<1x1xf32>
      %cst_28 = arith.constant 0.000000e+00 : f32
      %54 = vector.broadcast %cst_28 : f32 to vector<1x128xf32>
      %55 = vector.broadcast %53 : vector<1x1xf32> to vector<1x128xf32>
      %56 = arith.addf %54, %55 : vector<1x128xf32>
      %c0_29 = arith.constant 0 : index
      %c0_30 = arith.constant 0 : index
      %57 = vector.load %arg10[%c0_29, %c0_30] : memref<1x128xf32, #tpu.memory_space<vmem>>, vector<1x128xf32>
      tpu.vector_store %arg10[%c0_29, %c0_30], %56 {strides = array<i32>} : memref<1x128xf32, #tpu.memory_space<vmem>>, vector<1x128xf32>,
      %c0_31 = arith.constant 0 : index
      %c0_32 = arith.constant 0 : index
      %58 = vector.load %arg10[%c0_31, %c0_32] : memref<1x128xf32, #tpu.memory_space<vmem>>, vector<1x64xf32>
      tpu.vector_store %arg10[%c0_31, %c0_32], %50 {strides = array<i32>} : memref<1x128xf32, #tpu.memory_space<vmem>>, vector<1x64xf32>,
    } else {
    }
    return
  }
  func.func @transform_0(%arg0: i32) -> (i32, i32) {
    %c0_i32 = arith.constant 0 : i32
    %c0_i32_0 = arith.constant 0 : i32
    return %c0_i32, %arg0 : i32, i32
  }
  func.func @transform_1(%arg0: i32) -> (i32, i32) {
    %c0_i32 = arith.constant 0 : i32
    %c0_i32_0 = arith.constant 0 : i32
    %c0_i32_1 = arith.constant 0 : i32
    return %c0_i32, %c0_i32_0 : i32, i32
  }
  func.func @transform_2(%arg0: i32) -> (i32, i32) {
    %c0_i32 = arith.constant 0 : i32
    %c0_i32_0 = arith.constant 0 : i32
    %c0_i32_1 = arith.constant 0 : i32
    return %c0_i32, %c0_i32_0 : i32, i32
  }
  func.func @transform_3(%arg0: i32) -> (i32, i32) {
    %c0_i32 = arith.constant 0 : i32
    %c0_i32_0 = arith.constant 0 : i32
    %c0_i32_1 = arith.constant 0 : i32
    return %c0_i32, %c0_i32_0 : i32, i32
  }
  func.func @transform_4(%arg0: i32) -> (i32, i32) {
    %c0_i32 = arith.constant 0 : i32
    %c0_i32_0 = arith.constant 0 : i32
    %c0_i32_1 = arith.constant 0 : i32
    return %c0_i32, %c0_i32_0 : i32, i32
  }
  func.func @transform_5(%arg0: i32) -> (i32, i32) {
    %c0_i32 = arith.constant 0 : i32
    %c0_i32_0 = arith.constant 0 : i32
    %c0_i32_1 = arith.constant 0 : i32
    return %c0_i32, %c0_i32_0 : i32, i32
  }
  func.func @transform_6(%arg0: i32) -> (i32, i32) {
    %c0_i32 = arith.constant 0 : i32
    %c0_i32_0 = arith.constant 0 : i32
    %c0_i32_1 = arith.constant 0 : i32
    return %c0_i32, %c0_i32_0 : i32, i32
  }
  func.func @transform_7(%arg0: i32) -> (i32, i32) {
    %c0_i32 = arith.constant 0 : i32
    %c0_i32_0 = arith.constant 0 : i32
    %c0_i32_1 = arith.constant 0 : i32
    return %c0_i32, %c0_i32_0 : i32, i32
  }
  func.func @transform_8(%arg0: i32) -> (i32, i32) {
    %c0_i32 = arith.constant 0 : i32
    %c0_i32_0 = arith.constant 0 : i32
    return %c0_i32, %arg0 : i32, i32
  }
  func.func @transform_9(%arg0: i32) -> (i32, i32) {
    %c0_i32 = arith.constant 0 : i32
    %c0_i32_0 = arith.constant 0 : i32
    return %c0_i32, %arg0 : i32, i32
  }
}

</mosaic_0001>

<bundles_post_ra>
// kernel: vqvae_forward.1
= control target key start
LH: loop header
LB: loop body
LE: loop exit
PB: predicated region body
PF: predicated region fallthrough
CT: control target
= control target key end

     0   :  { %s2413_s30 = smov 0   ;;  %s3061_s0 = inlined_call_operand.vmem [shape: f32[4,768], index: 0, kind: input, shape index: {}]   ;;  %s3062_s1 = inlined_call_operand.vmem [shape: f32[32,4], index: 1, kind: input, shape index: {}]   ;;  %s3063_s2 = inlined_call_operand.vmem [shape: f32[32,1], index: 2, kind: input, shape index: {}]   ;;  %s3064_s3 = inlined_call_operand.vmem [shape: bf16[64,32], index: 3, kind: input, shape index: {}]   ;;  %s3065_s4 = inlined_call_operand.vmem [shape: f32[64,1], index: 4, kind: input, shape index: {}]   ;;  %s3066_s5 = inlined_call_operand.vmem [shape: f32[32,64], index: 5, kind: input, shape index: {}]   ;;  %s3067_s6 = inlined_call_operand.vmem [shape: f32[4,64], index: 6, kind: input, shape index: {}]   ;;  %s3068_s7 = inlined_call_operand.vmem [shape: f32[4,1], index: 7, kind: input, shape index: {}]   ;;  %s3069_s8 = inlined_call_operand.vmem [shape: f32[4,768], index: 8, kind: output, shape index: {0}]   ;;  %s3070_s9 = inlined_call_operand.vmem [shape: f32[1,256], index: 9, kind: output, shape index: {1}]  }
   0x1 LB: > { %s2419_s10 = sadd.s32 4294967295, %s2346_s30   ;;  %p1883_p0 = scmp.ge.s32.totalorder %s2346_s30, 1  ;;  %s2346_s30 = sphi %s2413_s30, %s20_s30  }
   0x2   : > { %p291_p1 = scmp.lt.s32.totalorder %s2346_s30, 3 }
   0x4   : > { %p292_p2 = pnand %p1883_p0, %p291_p1 }
   0x5   : > { %s330_s11 = smul.u32 (!%p292_p2), 3, %s2419_s10  ;;  %v348_v0 = vld [vmem:[%s3062_s1] sm:$0xff] (!%p292_p2)  ;;  %vm379_vm0 = vcmask (!%p292_p2), 31744   ;;  %p342_p3 = scmp.lt.s32.totalorder (!%p292_p2), %s2419_s10, 1  ;;  %v2348_v2 = vmov (!%p292_p2), 0.0   ;;  %v2349_v3 = vmov (!%p292_p2), 0  }
   0x6   : > { %295 = sbr.rel (%p292_p2) target bundleno = 1289 (0x509), region = 52  ;;  %2095 = vmatprep.mubr.msk.f32.mxu1 (!%p292_p2), %vm379_vm0, %v348_v0  ;;  %v352_v1 = vld [vmem:[%s3063_s2] sm:$0xff] (!%p292_p2)  ;;  %463 = vmatprep.mubr.f32.mxu0 (!%p292_p2), %v2348_v2  ;;  %v354_v4 = vld [vmem:[%s3063_s2 + $0x10] sm:$0xff] (!%p292_p2)  ;;  %v353_v5 = vld [vmem:[%s3063_s2 + $0x8] sm:$0xff] (!%p292_p2)  ;;  %vm392_vm1 = vcmask (!%p292_p2), 1043456   ;;  %vm627_vm2 = vcmask (!%p292_p2), 261120  }
   0x7   : > { %p331_p4 = scmp.lt.s32.totalorder (!%p292_p2), %s330_s11, 5  ;;  %2333 = vset.pattern.permute.xlu0 (!%p292_p2), %v2349_v3  ;;  %2334 = vset.pattern.permute.xlu1 (!%p292_p2), %v2349_v3  ;;  %v355_v6 = vld [vmem:[%s3063_s2 + $0x18] sm:$0xff] (!%p292_p2)  ;;  %v349_v7 = vld [vmem:[%s3062_s1 + $0x8] sm:$0xff] (!%p292_p2)  ;;  %v350_v11 = vld [vmem:[%s3062_s1 + $0x10] sm:$0xff] (!%p292_p2)  ;;  %vm3082_vm3 = vcmask (!%p292_p2), 523264   ;;  %p1991_p5 = scmp.ge.s32.totalorder (!%p292_p2), %s2419_s10, 1 }
   0x8   : > { %358 = vperm.xlu0 (!%p292_p2), %2333, %v352_v1   ;;  %368 = vperm.xlu1 (!%p292_p2), %2334, %v354_v4   ;;  %v585_v12 = vld [vmem:[%s3065_s4] sm:$0xff] (!%p292_p2)  ;;  %v586_v13 = vld [vmem:[%s3065_s4 + $0x8] sm:$0xff] (!%p292_p2)  ;;  %v351_v14 = vld [vmem:[%s3062_s1 + $0x18] sm:$0xff] (!%p292_p2) }
   0x9   : > { %v587_v15 = vld [vmem:[%s3065_s4 + $0x10] sm:$0xff] (!%p292_p2)  ;;  %v588_v16 = vld [vmem:[%s3065_s4 + $0x18] sm:$0xff] (!%p292_p2)  ;;  %v589_v17 = vld [vmem:[%s3065_s4 + $0x20] sm:$0xff] (!%p292_p2) }
   0xa   : > { %v590_v18 = vld [vmem:[%s3065_s4 + $0x28] sm:$0xff] (!%p292_p2)  ;;  %v591_v19 = vld [vmem:[%s3065_s4 + $0x30] sm:$0xff] (!%p292_p2)  ;;  %v592_v20 = vld [vmem:[%s3065_s4 + $0x38] sm:$0xff] (!%p292_p2) }
   0xb   : > { %v1271_v21 = vld [vmem:[%s3068_s7] sm:$0xf] (!%p292_p2)  ;;  %v2337_v56 = vld [vmem:[%s3064_s3 + $0x8] sm:$0xff] (!%p292_p2)   ;;  %v2338_v58 = vld [vmem:[%s3064_s3 + $0x10] sm:$0xff] (!%p292_p2)  }
   0xc   : > { %363 = vperm.xlu0 (!%p292_p2), %2333, %v353_v5   ;;  %373 = vperm.xlu1 (!%p292_p2), %2334, %v355_v6   ;;  %v2512_v22 = vld [vmem:[%s3064_s3] sm:$0xff] (!%p292_p2)  }
   0xd   : > { %s343_s18 = scalar_select %p342_p3, %s2419_s10, 1 }
   0xe   : > { %s3128_s11 = smov (!%p331_p4, %s330_s11), 5 }
   0xf   : > { %s2447_s23 = scalar_lea.vmem %s3070_s9, %s343_s18  ;;  %s1884_s26 = sshll.u32 %s3128_s11, 2 }
  0x10   : > { %s334_s13 = scalar_lea.vmem %s3061_s0, %s1884_s26  ;;  %780 = vperm.xlu0 %2333, %v585_v12   ;;  %785 = vperm.xlu1 %2334, %v586_v13   ;;  %s2980_s25 = scalar_lea.vmem %s3069_s8, %s1884_s26 }
  0x11   : > { %v347_v8 = vld [vmem:[%s334_s13 + $0x8] sm:$0xf]  ;;  %v346_v9 = vld [vmem:[%s334_s13] sm:$0xff] }
  0x12   : > { %2093 = vmatprep.subr.msk.mxu1 %vm392_vm1, %v347_v8  ;;  %v378_v10 = vcombine.high %v346_v9, %v346_v9 }
  0x13   : > { %2094 = vmatpush3.msk.msra.mxu1 %vm392_vm1, %v347_v8  ;;  %v2339_v8 = vld [vmem:[%s3064_s3 + $0x18] sm:$0xff]  }
  0x14   : > { %1886 = vmatprep.subr.msk.mxu0 %vm392_vm1, %v378_v10  ;;  %2096 = vmatmul.mubr.msk.f32.vlgmr.msra.gmra.mrb[0].mxu1 %vm379_vm0, %v349_v7  ;;  %v2600_v10 = vld [vmem:[%s3066_s5] sm:$0xff] }
  0x15   : > { %1887 = vmatpush1.msk.msra.mxu0 %vm392_vm1, %v346_v9  ;;  %2098 = vmatprep.mubr.msk.f32.mxu1 %vm379_vm0, %v350_v11 }
  0x16   : > { %1888 = vmatmul.mubr.msk.f32.vlgmr.msra.gmra.mrb[0].mxu0 %vm379_vm0, %v348_v0  ;;  %790 = vperm.xlu0 %2333, %v587_v15  }
  0x17   : > { %469 = vmatprep.mubr.f32.mxu0 %v2348_v2  ;;  %795 = vperm.xlu1 %2334, %v588_v16  }
  0x18   : > { %2099 = vmatmul.mubr.msk.f32.gmra.mrb[2].mxu1 %vm379_vm0, %v351_v14 }
  0x19   : > { %672 = vmatprep.mubr.bf16.mxu1 %v2349_v3 }
  0x1a   : > { %1889 = vmatmul.mubr.msk.f32.gmra.mrb[2].mxu0 %vm379_vm0, %v349_v7  ;;  %800 = vperm.xlu0 %2333, %v589_v17  }
  0x1b   : > { %475 = vmatprep.mubr.f32.mxu0 %v2348_v2  ;;  %805 = vperm.xlu1 %2334, %v590_v18  }
  0x1e   : > { %1890 = vmatmul.mubr.msk.f32.gmra.mrb[4].mxu0 %vm379_vm0, %v350_v11  ;;  %810 = vperm.xlu0 %2333, %v591_v19  }
  0x1f   : > { %481 = vmatprep.mubr.f32.mxu0 %v2348_v2  ;;  %815 = vperm.xlu1 %2334, %v592_v20  }
  0x22   : > { %1891 = vmatmul.mubr.msk.f32.gmra.mrb[6].mxu0 %vm379_vm0, %v351_v14  ;;  %1274 = vperm.xlu0 %2333, %v1271_v21  }
  0x23   : > { %2105 = vmatprep.mubr.msk.bf16.mxu0 %vm627_vm2, %v2512_v22 }
  0x87   : > { %v359_v23 = vpop.permute.xlu0 %358  ;;  %v369_v24 = vpop.permute.xlu1 %368 }
  0x8b   : > { %v364_v25 = vpop.permute.xlu0 %363  ;;  %v374_v33 = vpop.permute.xlu1 %373 }
  0x8f   : > { %v781_v11 = vpop.permute.xlu0 %780  ;;  %v786_v12 = vpop.permute.xlu1 %785 }
  0x95   : > { %v791_v13 = vpop.permute.xlu0 %790 }
  0x96   : > { %v796_v15 = vpop.permute.xlu1 %795 }
  0x99   : > { %v801_v19 = vpop.permute.xlu0 %800 }
  0xe7   : > { %v2097_v26 = vpop.f32.mrb[0].mxu1 }
  0xe8   : > { %v2516_v27 = vadd.f32 %v2097_v26, %v364_v25  ;;  %v554_v28 = vpop.f32.mrb[1].mxu1 }
  0xe9   : > { %v2518_v29 = vadd.f32 %v554_v28, %v359_v23  ;;  %v465_v30 = vpop.f32.mrb[0].mxu0  ;;  %v2616_v28 = vpop.permute.xlu0 %810 }
  0xea   : > { %v578_v31 = vmax.f32 %v2516_v27, 0.0  ;;  %v467_v32 = vpop.f32.mrb[1].mxu0  ;;  %v2532_v42 = vadd.f32 %v465_v30, %v359_v23 }
  0xeb   : > { %v3081_v34 = vmax.f32 %v2518_v29, 0.0  ;;  %v2100_v35 = vpop.f32.mrb[2].mxu1  ;;  %v2528_v39 = vadd.f32 %v467_v32, %v359_v23 }
  0xec   : > { %v2522_v36 = vadd.f32 %v2100_v35, %v374_v33  ;;  %v564_v37 = vpop.f32.mrb[3].mxu1  ;;  %v3078_v53 = vmax.f32 %v2532_v42, 0.0 }
  0xed   : > { %v603_v38 = vpack.c.bf16 %v578_v31, %v3081_v34  ;;  %v2530_v40 = vadd.f32 %v564_v37, %v369_v24  ;;  %v471_v41 = vpop.f32.mrb[2].mxu0  ;;  %v3077_v49 = vmax.f32 %v2528_v39, 0.0 }
  0xee   : > { %v3080_v43 = vmax.f32 %v2522_v36, 0.0  ;;  %v2535_v44 = vadd.f32 %v471_v41, %v364_v25  ;;  %v473_v45 = vpop.f32.mrb[3].mxu0 }
  0xef   : > { %v3079_v46 = vmax.f32 %v2530_v40, 0.0  ;;  %v2538_v47 = vadd.f32 %v473_v45, %v364_v25  ;;  %2101 = vmatprep.subr.bf16.mxu0 %v603_v38  ;;  %v806_v25 = vpop.permute.xlu1 %805 }
  0xf0   : > { %v3076_v48 = vmax.f32 %v2535_v44, 0.0  ;;  %2102 = vmatpush3.bf16.msra.mxu0 %v603_v38 }
  0xf1   : > { %v606_v50 = vpack.c.bf16 %v3080_v43, %v3079_v46  ;;  %v3075_v51 = vmax.f32 %v2538_v47, 0.0  ;;  %v477_v52 = vpop.f32.mrb[4].mxu0 }
  0xf2   : > { %v479_v54 = vpop.f32.mrb[5].mxu0  ;;  %v601_v57 = vpack.c.bf16 %v3076_v48, %v3078_v53  ;;  %v2564_v61 = vadd.f32 %v477_v52, %v369_v24 }
  0xf3   : > { %v602_v55 = vpack.c.bf16 %v3075_v51, %v3077_v49  ;;  %2103 = vmatprep.subr.bf16.mxu0 %v606_v50  ;;  %v2562_v59 = vadd.f32 %v479_v54, %v369_v24  ;;  %v2626_v54 = vpop.permute.xlu1 %815 }
  0xf4   : > { %2104 = vmatpush3.bf16.msra.mxu0 %v606_v50  ;;  %v3074_v6 = vmax.f32 %v2564_v61, 0.0 }
  0xf5   : > { %v483_v60 = vpop.f32.mrb[6].mxu0  ;;  %640 = vmatprep.subr.bf16.mxu1 %v602_v55  ;;  %v3073_v4 = vmax.f32 %v2562_v59, 0.0 }
  0xf6   : > { %v2566_v62 = vadd.f32 %v483_v60, %v374_v33  ;;  %v485_v63 = vpop.f32.mrb[7].mxu0  ;;  %641 = vmatpush1.bf16.msra.mxu1 %v601_v57 }
  0xf7   : > { %v2568_v0 = vadd.f32 %v485_v63, %v374_v33  ;;  %2106 = vmatmul.mubr.msk.bf16.vlgmr.msra.gmra.mrb[8].mxu0 %vm627_vm2, %v2337_v56 }
  0xf8   : > { %v3072_v1 = vmax.f32 %v2566_v62, 0.0  ;;  %2109 = vmatprep.mubr.msk.bf16.mxu0 %vm627_vm2, %v2338_v58 }
  0xf9   : > { %v3071_v5 = vmax.f32 %v2568_v0, 0.0 }
  0xfa   : > { %v604_v9 = vpack.c.bf16 %v3072_v1, %v3074_v6 }
  0xfb   : > { %v605_v7 = vpack.c.bf16 %v3071_v5, %v3073_v4 }
  0xfd   : > { %642 = vmatprep.subr.bf16.mxu1 %v605_v7 }
  0xfe   : > { %643 = vmatpush1.bf16.msra.mxu1 %v604_v9 }
  0xff   : > { %2110 = vmatmul.mubr.msk.bf16.gmra.mrb[12].mxu0 %vm627_vm2, %v2339_v8 }
 0x100   : > { %1160 = vmatprep.mubr.f32.mxu0 %v2348_v2 }
 0x101   : > { %1901 = vmatmul.mubr.msk.bf16.vlgmr.msra.gmra.mrb[4].mxu1 %vm627_vm2, %v2512_v22 }
 0x102   : > { %682 = vmatprep.mubr.bf16.mxu1 %v2349_v3 }
 0x109   : > { %1902 = vmatmul.mubr.msk.bf16.gmra.mrb[8].mxu1 %vm627_vm2, %v2337_v56 }
 0x10a   : > { %692 = vmatprep.mubr.bf16.mxu1 %v2349_v3 }
 0x111   : > { %1903 = vmatmul.mubr.msk.bf16.gmra.mrb[12].mxu1 %vm627_vm2, %v2338_v58 }
 0x112   : > { %702 = vmatprep.mubr.bf16.mxu1 %v2349_v3 }
 0x119   : > { %1904 = vmatmul.mubr.msk.bf16.gmra.mrb[16].mxu1 %vm627_vm2, %v2339_v8 }
 0x11a   : > { %2129 = vmatprep.mubr.msk.f32.mxu1 %vm3082_vm3, %v2600_v10 }
 0x1ca   : > { %v2107_v14 = vpop.f32.mrb[8].mxu0 }
 0x1cb   : > { %v2604_v16 = vadd.f32 %v2107_v14, %v791_v13  ;;  %v747_v17 = vpop.f32.mrb[9].mxu0 }
 0x1cc   : > { %v2606_v3 = vadd.f32 %v781_v11, %v747_v17  ;;  %v2108_v18 = vpop.f32.mrb[10].mxu0 }
 0x1cd   : > { %v2608_v20 = vadd.f32 %v2108_v18, %v796_v15  ;;  %v750_v21 = vpop.f32.mrb[11].mxu0  ;;  %v842_v18 = vlaneseq }
 0x1ce   : > { %v877_v22 = vmin.f32 %v2606_v3, %v2604_v16  ;;  %v2612_v23 = vadd.f32 %v786_v12, %v750_v21 }
 0x1d0   : > { %v878_v24 = vmin.f32 %v2612_v23, %v2608_v20 }
 0x1d2   : > { %v2111_v26 = vpop.f32.mrb[12].mxu0 }
 0x1d3   : > { %v763_v30 = vpop.f32.mrb[13].mxu0  ;;  %v2621_v41 = vadd.f32 %v2111_v26, %v2616_v28 }
 0x1d4   : > { %v2618_v32 = vadd.f32 %v801_v19, %v763_v30  ;;  %v674_v33 = vpop.f32.mrb[4].mxu1  ;;  %v2112_v35 = vpop.f32.mrb[14].mxu0 }
 0x1d5   : > { %v676_v37 = vpop.f32.mrb[5].mxu1  ;;  %v766_v38 = vpop.f32.mrb[15].mxu0  ;;  %v2630_v57 = vadd.f32 %v2112_v35, %v2626_v54  ;;  %v2634_v8 = vadd.f32 %v781_v11, %v674_v33 }
 0x1d6   : > { %v879_v45 = vmin.f32 %v877_v22, %v2618_v32  ;;  %v2624_v50 = vadd.f32 %v806_v25, %v766_v38  ;;  %v678_v52 = vpop.f32.mrb[6].mxu1  ;;  %v2638_v17 = vadd.f32 %v781_v11, %v676_v37 }
 0x1d7   : > { %v680_v55 = vpop.f32.mrb[7].mxu1  ;;  %v2642_v30 = vadd.f32 %v786_v12, %v678_v52 }
 0x1d8   : > { %v881_v56 = vmin.f32 %v879_v45, %v2621_v41  ;;  %v880_v58 = vmin.f32 %v878_v24, %v2624_v50  ;;  %v2648_v45 = vadd.f32 %v786_v12, %v680_v55 }
 0x1da   : > { %v882_v60 = vmin.f32 %v880_v58, %v2630_v57 }
 0x1dc   : > { %v883_v63 = vmin.f32 %v881_v56, %v882_v60  ;;  %v684_v7 = vpop.f32.mrb[8].mxu1  ;;  %v2656_v56 = vshrl.u32 %v842_v18, 7 }
 0x1dd   : > { %v2636_v9 = vadd.f32 %v791_v13, %v684_v7  ;;  %v686_v14 = vpop.f32.mrb[9].mxu1 }
 0x1de   : > { %v884_v21 = vrot.slane %v883_v63, 4  ;;  %v2640_v22 = vadd.f32 %v791_v13, %v686_v14  ;;  %v688_v26 = vpop.f32.mrb[10].mxu1  ;;  %v2663_v55 = vadd.s32 8, %v2656_v56  ;;  %v2671_v18 = vadd.s32 24, %v2656_v56 }
 0x1df   : > { %v851_v24 = vmin.f32 %v2634_v8, %v2636_v9  ;;  %v2646_v35 = vadd.f32 %v796_v15, %v688_v26  ;;  %v690_v38 = vpop.f32.mrb[11].mxu1  ;;  %v2668_v26 = vadd.s32 16, %v2656_v56  ;;  %v2680_v5 = vadd.s32 40, %v2656_v56 }
 0x1e0   : > { %v885_v33 = vmin.f32 %v883_v63, %v884_v21  ;;  %v864_v11 = vmin.f32 %v2638_v17, %v2640_v22  ;;  %v2652_v37 = vadd.f32 %v796_v15, %v690_v38  ;;  %v2684_v1 = vadd.s32 48, %v2656_v56 }
 0x1e1   : > { %v852_v13 = vmin.f32 %v2642_v30, %v2646_v35  ;;  %v2687_v4 = vadd.s32 56, %v2656_v56 }
 0x1e2   : > { %v886_v52 = vrot.slane %v885_v33, 2  ;;  %v865_v58 = vmin.f32 %v2648_v45, %v2652_v37 }
 0x1e4   : > { %v887_v60 = vmin.f32 %v885_v33, %v886_v52  ;;  %v694_v7 = vpop.f32.mrb[12].mxu1 }
 0x1e5   : > { %v2660_v14 = vadd.f32 %v801_v19, %v694_v7  ;;  %v696_v12 = vpop.f32.mrb[13].mxu1  ;;  %v2677_v7 = vadd.s32 32, %v2656_v56 }
 0x1e6   : > { %v888_v63 = vrot.slane %v887_v60, 1  ;;  %v2665_v15 = vadd.f32 %v801_v19, %v696_v12  ;;  %v698_v21 = vpop.f32.mrb[14].mxu1 }
 0x1e7   : > { %v853_v38 = vmin.f32 %v851_v24, %v2660_v14  ;;  %v2674_v33 = vadd.f32 %v806_v25, %v698_v21  ;;  %v700_v52 = vpop.f32.mrb[15].mxu1 }
 0x1e8   : > { %v889_v19 = vmin.f32 %v887_v60, %v888_v63  ;;  %v866_v12 = vmin.f32 %v864_v11, %v2665_v15  ;;  %v2690_v21 = vadd.f32 %v806_v25, %v700_v52 }
 0x1e9   : > { %v854_v24 = vmin.f32 %v852_v13, %v2674_v33 }
 0x1ea   : > { %vm892_vm4 = vcmp.le.f32.partialorder %v2606_v3, %v889_v19  ;;  %vm895_vm5 = vcmp.le.f32.partialorder %v2612_v23, %v889_v19  ;;  %vm898_vm6 = vcmp.le.f32.partialorder %v2604_v16, %v889_v19  ;;  %vm901_vm7 = vcmp.le.f32.partialorder %v2608_v20, %v889_v19 }
 0x1eb   : > { %vm904_vm8 = vcmp.le.f32.partialorder %v2618_v32, %v889_v19  ;;  %vm907_vm9 = vcmp.le.f32.partialorder %v2624_v50, %v889_v19  ;;  %vm910_vm10 = vcmp.le.f32.partialorder %v2621_v41, %v889_v19  ;;  %vm913_vm11 = vcmp.le.f32.partialorder %v2630_v57, %v889_v19 }
 0x1ec   : > { %v916_v11 = vsel %vm892_vm4, %v2656_v56, 64  ;;  %v919_v25 = vsel %vm895_vm5, %v2663_v55, 64  ;;  %v922_v3 = vsel %vm898_vm6, %v2668_v26, 64  ;;  %v925_v23 = vsel %vm901_vm7, %v2671_v18, 64  ;;  %v704_v13 = vpop.f32.mrb[16].mxu1 }
 0x1ed   : > { %v928_v16 = vsel %vm904_vm8, %v2677_v7, 64  ;;  %v931_v20 = vsel %vm907_vm9, %v2680_v5, 64  ;;  %v934_v32 = vsel %vm910_vm10, %v2684_v1, 64  ;;  %v937_v50 = vsel %vm913_vm11, %v2687_v4, 64  ;;  %v706_v41 = vpop.f32.mrb[17].mxu1 }
 0x1ee   : > { %vm984_vm12 = vcmp.lt.s32.totalorder %v916_v11, %v922_v3  ;;  %vm986_vm13 = vcmp.lt.s32.totalorder %v919_v25, %v925_v23  ;;  %v867_v57 = vmin.f32 %v865_v58, %v2690_v21  ;;  %v836_v60 = vadd.f32 %v2616_v28, %v704_v13  ;;  %v708_v63 = vpop.f32.mrb[18].mxu1 }
 0x1ef   : > { %v985_v52 = vsel %vm984_vm12, %v916_v11, %v922_v3  ;;  %v987_v19 = vsel %vm986_vm13, %v919_v25, %v925_v23  ;;  %v2711_v6 = vadd.f32 %v2616_v28, %v706_v41  ;;  %v839_v51 = vadd.f32 %v2626_v54, %v708_v63  ;;  %v710_v48 = vpop.f32.mrb[19].mxu1 }
 0x1f0   : > { %vm988_vm14 = vcmp.lt.s32.totalorder %v985_v52, %v928_v16  ;;  %vm990_vm15 = vcmp.lt.s32.totalorder %v987_v19, %v931_v20  ;;  %v855_v49 = vmin.f32 %v853_v38, %v836_v60  ;;  %v2715_v53 = vadd.f32 %v2626_v54, %v710_v48 }
 0x1f1   : > { %v989_v46 = vsel %vm988_vm14, %v985_v52, %v928_v16  ;;  %v991_v43 = vsel %vm990_vm15, %v987_v19, %v931_v20  ;;  %v868_v58 = vmin.f32 %v866_v12, %v2711_v6  ;;  %v856_v13 = vmin.f32 %v854_v24, %v839_v51 }
 0x1f2   : > { %vm992_vm0 = vcmp.lt.s32.totalorder %v989_v46, %v934_v32  ;;  %vm994_vm1 = vcmp.lt.s32.totalorder %v991_v43, %v937_v50  ;;  %v869_v11 = vmin.f32 %v867_v57, %v2715_v53 }
 0x1f3   : > { %v993_v28 = vsel %vm992_vm0, %v989_v46, %v934_v32  ;;  %v995_v25 = vsel %vm994_vm1, %v991_v43, %v937_v50  ;;  %v857_v3 = vmin.f32 %v855_v49, %v856_v13 }
 0x1f4   : > { %vm996_vm2 = vcmp.lt.s32.totalorder %v993_v28, %v995_v25  ;;  %v870_v23 = vmin.f32 %v868_v58, %v869_v11 }
 0x1f5   : > { %v997_v41 = vsel %vm996_vm2, %v993_v28, %v995_v25  ;;  %v858_v63 = vrot.slane %v857_v3, 4 }
 0x1f6   : > { %v998_v38 = vrot.slane %v997_v41, 4  ;;  %v871_v34 = vrot.slane %v870_v23, 4 }
 0x1f7   : > { %v859_v48 = vmin.f32 %v857_v3, %v858_v63 }
 0x1f8   : > { %vm999_vm4 = vcmp.lt.s32.totalorder %v997_v41, %v998_v38  ;;  %v872_v54 = vmin.f32 %v870_v23, %v871_v34 }
 0x1f9   : > { %v1000_v16 = vsel %vm999_vm4, %v997_v41, %v998_v38  ;;  %v860_v20 = vrot.slane %v859_v48, 2 }
 0x1fa   : > { %v1001_v12 = vrot.slane %v1000_v16, 2  ;;  %v873_v24 = vrot.slane %v872_v54, 2 }
 0x1fb   : > { %v861_v52 = vmin.f32 %v859_v48, %v860_v20 }
 0x1fc   : > { %vm1002_vm5 = vcmp.lt.s32.totalorder %v1000_v16, %v1001_v12  ;;  %v874_v19 = vmin.f32 %v872_v54, %v873_v24  ;;  %v2350_v24 = vmov 1.0|1.0  }
 0x1fd   : > { %v1003_v57 = vsel %vm1002_vm5, %v1000_v16, %v1001_v12  ;;  %v862_v46 = vrot.slane %v861_v52, 1 }
 0x1fe   : > { %v1004_v43 = vrot.slane %v1003_v57, 1  ;;  %v875_v49 = vrot.slane %v874_v19, 1 }
 0x1ff   : > { %v863_v32 = vmin.f32 %v861_v52, %v862_v46 }
 0x200   : > { %vm1005_vm6 = vcmp.lt.s32.totalorder %v1003_v57, %v1004_v43  ;;  %v2719_v50 = vmin.f32 %v874_v19, %v875_v49 }
 0x201   : > { %v2721_v58 = vsel %vm1005_vm6, %v1003_v57, %v1004_v43  ;;  %vm890_vm7 = vcmp.le.f32.partialorder %v2634_v8, %v863_v32  ;;  %vm893_vm8 = vcmp.le.f32.partialorder %v2642_v30, %v863_v32  ;;  %vm896_vm9 = vcmp.le.f32.partialorder %v2636_v9, %v863_v32 }
 0x202   : > { %vm899_vm10 = vcmp.le.f32.partialorder %v2646_v35, %v863_v32  ;;  %vm902_vm11 = vcmp.le.f32.partialorder %v2660_v14, %v863_v32  ;;  %vm905_vm12 = vcmp.le.f32.partialorder %v2674_v33, %v863_v32  ;;  %vm908_vm13 = vcmp.le.f32.partialorder %v836_v60, %v863_v32 }
 0x203   : > { %vm911_vm14 = vcmp.le.f32.partialorder %v839_v51, %v863_v32  ;;  %v914_v34 = vsel %vm890_vm7, %v2656_v56, 64  ;;  %v917_v13 = vsel %vm893_vm8, %v2663_v55, 64  ;;  %v920_v11 = vsel %vm896_vm9, %v2668_v26, 64 }
 0x204   : > { %v923_v8 = vsel %vm899_vm10, %v2671_v18, 64  ;;  %v926_v30 = vsel %vm902_vm11, %v2677_v7, 64  ;;  %v929_v9 = vsel %vm905_vm12, %v2680_v5, 64  ;;  %v932_v35 = vsel %vm908_vm13, %v2684_v1, 64 }
 0x205   : > { %v935_v14 = vsel %vm911_vm14, %v2687_v4, 64  ;;  %vm938_vm15 = vcmp.lt.s32.totalorder %v914_v34, %v920_v11  ;;  %vm940_vm0 = vcmp.lt.s32.totalorder %v917_v13, %v923_v8  ;;  %vm891_vm1 = vcmp.le.f32.partialorder %v2638_v17, %v2719_v50 }
 0x206   : > { %v939_v51 = vsel %vm938_vm15, %v914_v34, %v920_v11  ;;  %v941_v33 = vsel %vm940_vm0, %v917_v13, %v923_v8  ;;  %vm894_vm2 = vcmp.le.f32.partialorder %v2648_v45, %v2719_v50  ;;  %vm897_vm4 = vcmp.le.f32.partialorder %v2640_v22, %v2719_v50 }
 0x207   : > { %vm942_vm5 = vcmp.lt.s32.totalorder %v939_v51, %v926_v30  ;;  %vm944_vm6 = vcmp.lt.s32.totalorder %v941_v33, %v929_v9  ;;  %vm900_vm7 = vcmp.le.f32.partialorder %v2652_v37, %v2719_v50  ;;  %vm903_vm8 = vcmp.le.f32.partialorder %v2665_v15, %v2719_v50 }
 0x208   : > { %v943_v60 = vsel %vm942_vm5, %v939_v51, %v926_v30  ;;  %v945_v28 = vsel %vm944_vm6, %v941_v33, %v929_v9  ;;  %vm906_vm9 = vcmp.le.f32.partialorder %v2690_v21, %v2719_v50  ;;  %vm909_vm10 = vcmp.le.f32.partialorder %v2711_v6, %v2719_v50  ;;  %v1080_v9 = vld [vmem:[%s3066_s5 + $0x8] sm:$0xff]  ;;  %v1082_v33 = vld [vmem:[%s3066_s5 + $0x18] sm:$0xff] }
 0x209   : > { %vm946_vm11 = vcmp.lt.s32.totalorder %v943_v60, %v932_v35  ;;  %vm948_vm12 = vcmp.lt.s32.totalorder %v945_v28, %v935_v14  ;;  %vm912_vm13 = vcmp.le.f32.partialorder %v2715_v53, %v2719_v50  ;;  %v915_v37 = vsel %vm891_vm1, %v2656_v56, 64 }
 0x20a   : > { %v947_v25 = vsel %vm946_vm11, %v943_v60, %v932_v35  ;;  %v949_v15 = vsel %vm948_vm12, %v945_v28, %v935_v14  ;;  %v918_v21 = vsel %vm894_vm2, %v2663_v55, 64  ;;  %v921_v6 = vsel %vm897_vm4, %v2668_v26, 64  ;;  %v1081_v14 = vld [vmem:[%s3066_s5 + $0x10] sm:$0xff] }
 0x20b   : > { %vm950_vm14 = vcmp.lt.s32.totalorder %v947_v25, %v949_v15  ;;  %v924_v3 = vsel %vm900_vm7, %v2671_v18, 64  ;;  %v927_v23 = vsel %vm903_vm8, %v2677_v7, 64  ;;  %v930_v17 = vsel %vm906_vm9, %v2680_v5, 64 }
 0x20c   : > { %v951_v41 = vsel %vm950_vm14, %v947_v25, %v949_v15  ;;  %v933_v63 = vsel %vm909_vm10, %v2684_v1, 64  ;;  %vm961_vm15 = vcmp.lt.s32.totalorder %v915_v37, %v921_v6  ;;  %vm963_vm0 = vcmp.lt.s32.totalorder %v918_v21, %v924_v3 }
 0x20d   : > { %v952_v38 = vrot.slane %v951_v41, 4  ;;  %v962_v48 = vsel %vm961_vm15, %v915_v37, %v921_v6  ;;  %vm1009_vm1 = vcmp.eq.s32.totalorder %v2656_v56, %v2721_v58  ;;  %v964_v45 = vsel %vm963_vm0, %v918_v21, %v924_v3 }
 0x20e   : > { %vm965_vm2 = vcmp.lt.s32.totalorder %v962_v48, %v927_v23  ;;  %vm1012_vm4 = vcmp.eq.s32.totalorder %v2663_v55, %v2721_v58  ;;  %vm1015_vm5 = vcmp.eq.s32.totalorder %v2668_v26, %v2721_v58  ;;  %vm967_vm7 = vcmp.lt.s32.totalorder %v964_v45, %v930_v17 }
 0x20f   : > { %vm953_vm6 = vcmp.lt.s32.totalorder %v951_v41, %v952_v38  ;;  %v966_v22 = vsel %vm965_vm2, %v962_v48, %v927_v23  ;;  %vm2775_vm8 = vmpackc.low %vm1012_vm4, %vm1009_vm1  ;;  %vm1018_vm9 = vcmp.eq.s32.totalorder %v2671_v18, %v2721_v58  ;;  %v936_v20 = vsel %vm912_vm13, %v2687_v4, 64 }
 0x210   : > { %v954_v16 = vsel %vm953_vm6, %v951_v41, %v952_v38  ;;  %v968_v12 = vsel %vm967_vm7, %v964_v45, %v930_v17  ;;  %vm969_vm10 = vcmp.lt.s32.totalorder %v966_v22, %v933_v63  ;;  %2209 = vmatprep.subr.msk.bf16.mxu1 %vm2775_vm8, %v2350_v24  ;;  %vm2794_vm12 = vmpackc.low %vm1018_vm9, %vm1015_vm5  ;;  %vm1021_vm13 = vcmp.eq.s32.totalorder %v2677_v7, %v2721_v58 }
 0x211   : > { %v955_v52 = vrot.slane %v954_v16, 2  ;;  %v970_v19 = vsel %vm969_vm10, %v966_v22, %v933_v63  ;;  %vm971_vm11 = vcmp.lt.s32.totalorder %v968_v12, %v936_v20  ;;  %2211 = vmatpush3.bf16.msk.msra.mxu1 %vm2775_vm8, %v2350_v24  ;;  %vm1024_vm14 = vcmp.eq.s32.totalorder %v2680_v5, %v2721_v58 }
 0x212   : > { %v972_v57 = vsel %vm971_vm11, %v968_v12, %v936_v20  ;;  %2213 = vmatprep.subr.msk.bf16.mxu1 %vm2794_vm12, %v2350_v24  ;;  %vm2808_vm1 = vmpackc.low %vm1024_vm14, %vm1021_vm13  ;;  %v3088_v32 = vmov 0  ;;  %vm1027_vm2 = vcmp.eq.s32.totalorder %v2684_v1, %v2721_v58  ;;  %vm1030_vm4 = vcmp.eq.s32.totalorder %v2687_v4, %v2721_v58 }
 0x213   : > { %vm956_vm15 = vcmp.lt.s32.totalorder %v954_v16, %v955_v52  ;;  %vm973_vm0 = vcmp.lt.s32.totalorder %v970_v19, %v972_v57  ;;  %v3089_v32 = vsel %vm2808_vm1, 4294967295, %v3088_v32  ;;  %vm2822_vm6 = vmpackc.low %vm1030_vm4, %vm1027_vm2  ;;  %v2351_v35 = vmov 0.0|0.0  }
 0x214   : > { %v957_v46 = vsel %vm956_vm15, %v954_v16, %v955_v52  ;;  %v974_v43 = vsel %vm973_vm0, %v970_v19, %v972_v57  ;;  %v3114_v25 = vmax.f32 %v2518_v29, 0.0  ;;  %v3115_v17 = vmax.f32 %v2522_v36, 0.0  ;;  %v1275_v16 = vpop.permute.xlu0 %1274 }
 0x215   : > { %v975_v49 = vrot.slane %v974_v43, 4  ;;  %2215 = vmatpush3.bf16.msk.msra.mxu1 %vm2794_vm12, %v2350_v24  ;;  %v958_v50 = vrot.slane %v957_v46, 1 }
 0x216   : > { %2217 = vmatprep.subr.msk.bf16.mxu1 %vm2808_vm1, %v2350_v24 }
 0x217   : > { %vm976_vm5 = vcmp.lt.s32.totalorder %v974_v43, %v975_v49  ;;  %vm959_vm7 = vcmp.lt.s32.totalorder %v957_v46, %v958_v50 }
 0x218   : > { %v977_v34 = vsel %vm976_vm5, %v974_v43, %v975_v49  ;;  %v960_v30 = vsel %vm959_vm7, %v957_v46, %v958_v50  ;;  %v3117_v46 = vmax.f32 %v2532_v42, 0.0  ;;  %v3118_v49 = vmax.f32 %v2528_v39, 0.0 }
 0x219   : > { %v978_v13 = vrot.slane %v977_v34, 2  ;;  %2219 = vmatpush3.bf16.msk.msra.mxu1 %vm2808_vm1, %v2350_v24  ;;  %vm1007_vm11 = vcmp.eq.s32.totalorder %v2656_v56, %v960_v30  ;;  %vm1010_vm13 = vcmp.eq.s32.totalorder %v2663_v55, %v960_v30 }
 0x21a   : > { %2221 = vmatprep.subr.msk.bf16.mxu1 %vm2822_vm6, %v2350_v24  ;;  %vm2859_vm5 = vmpackc.low %vm1010_vm13, %vm1007_vm11 }
 0x21b   : > { %vm979_vm9 = vcmp.lt.s32.totalorder %v977_v34, %v978_v13 }
 0x21c   : > { %v980_v8 = vsel %vm979_vm9, %v977_v34, %v978_v13  ;;  %vm1013_vm9 = vcmp.eq.s32.totalorder %v2668_v26, %v960_v30 }
 0x21d   : > { %v981_v58 = vrot.slane %v980_v8, 1  ;;  %2223 = vmatpush3.bf16.msk.msra.mxu1 %vm2822_vm6, %v2350_v24 }
 0x21e   : > { %2240 = vmatprep.subr.bf16.mxu1 %v2351_v35 }
 0x21f   : > { %vm982_vm10 = vcmp.lt.s32.totalorder %v980_v8, %v981_v58 }
 0x220   : > { %v983_v51 = vsel %vm982_vm10, %v980_v8, %v981_v58  ;;  %2130 = vmatmul.mubr.msk.f32.vlgmr.msra.gmra.mrb[20].mxu1 %vm3082_vm3, %v1080_v9  ;;  %vm1016_vm10 = vcmp.eq.s32.totalorder %v2671_v18, %v960_v30  ;;  %v3119_v8 = vmax.f32 %v2535_v44, 0.0 }
 0x221   : > { %2242 = vmatpush3.bf16.msk.msra.mxu1 %vm2775_vm8, %v2350_v24  ;;  %2132 = vmatprep.mubr.msk.f32.mxu1 %vm3082_vm3, %v1081_v14  ;;  %vm1008_vm14 = vcmp.eq.s32.totalorder %v2656_v56, %v983_v51  ;;  %vm1011_vm15 = vcmp.eq.s32.totalorder %v2663_v55, %v983_v51  ;;  %vm1014_vm0 = vcmp.eq.s32.totalorder %v2668_v26, %v983_v51 }
 0x222   : > { %2243 = vmatprep.subr.bf16.mxu1 %v2351_v35  ;;  %vm2851_vm2 = vmpackc.low %vm1011_vm15, %vm1008_vm14  ;;  %vm1017_vm4 = vcmp.eq.s32.totalorder %v2671_v18, %v983_v51  ;;  %vm1020_vm11 = vcmp.eq.s32.totalorder %v2677_v7, %v983_v51  ;;  %vm1023_vm13 = vcmp.eq.s32.totalorder %v2680_v5, %v983_v51  ;;  %vm2352_vm14 = vmmov 0  }
 0x223   : > { %2193 = vmatprep.subr.msk.bf16.mxu0 %vm2851_vm2, %v2350_v24  ;;  %vm2867_vm7 = vmpackc.low %vm1017_vm4, %vm1014_vm0  ;;  %vm1019_vm4 = vcmp.eq.s32.totalorder %v2677_v7, %v960_v30  ;;  %v1270_v7 = vld [vmem:[%s3067_s6] sm:$0xf] }
 0x224   : > { %2133 = vmatmul.mubr.msk.f32.gmra.mrb[22].mxu1 %vm3082_vm3, %v1082_v33  ;;  %2195 = vmatpush1.bf16.msk.msra.mxu0 %vm2859_vm5, %v2350_v24  ;;  %vm2882_vm15 = vmpackc.low %vm1016_vm10, %vm1013_vm9  ;;  %vm1022_vm3 = vcmp.eq.s32.totalorder %v2680_v5, %v960_v30  ;;  %vm1026_vm9 = vcmp.eq.s32.totalorder %v2684_v1, %v983_v51  ;;  %vm1029_vm10 = vcmp.eq.s32.totalorder %v2687_v4, %v983_v51 }
 0x225   : > { %2245 = vmatpush3.bf16.msk.msra.mxu1 %vm2794_vm12, %v2350_v24  ;;  %2197 = vmatprep.subr.msk.bf16.mxu0 %vm2867_vm7, %v2350_v24  ;;  %vm2889_vm0 = vmpackc.low %vm1023_vm13, %vm1020_vm11 }
 0x226   : > { %2246 = vmatprep.subr.bf16.mxu1 %v2351_v35  ;;  %2151 = vmatprep.mubr.msk.f32.mxu1 %vm2352_vm14, %v2348_v2  ;;  %vm2903_vm11 = vmpackc.low %vm1022_vm3, %vm1019_vm4  ;;  %vm1025_vm14 = vcmp.eq.s32.totalorder %v2684_v1, %v960_v30  ;;  %vm3108_vm4 = vcmask 523264  }
 0x227   : > { %vm2910_vm13 = vmpackc.low %vm1029_vm10, %vm1026_vm9 }
 0x228   : > { %2199 = vmatpush1.bf16.msk.msra.mxu0 %vm2882_vm15, %v2350_v24  ;;  %vm3109_vm9 = vmmov %vm3108_vm4 }
 0x229   : > { %2248 = vmatpush3.bf16.msk.msra.mxu1 %vm2808_vm1, %v2350_v24  ;;  %2201 = vmatprep.subr.msk.bf16.mxu0 %vm2889_vm0, %v2350_v24  ;;  %vm1028_vm1 = vcmp.eq.s32.totalorder %v2687_v4, %v960_v30 }
 0x22a   : > { %2249 = vmatprep.subr.bf16.mxu1 %v2351_v35  ;;  %vm2925_vm3 = vmpackc.low %vm1028_vm1, %vm1025_vm14 }
 0x22b   : > { %vm3110_vm1 = vmmov %vm3108_vm4 }
 0x22c   : > { %2203 = vmatpush1.bf16.msk.msra.mxu0 %vm2903_vm11, %v2350_v24  ;;  %vm3111_vm10 = vmmov %vm3110_vm1 }
 0x22d   : > { %2251 = vmatpush3.bf16.msk.msra.mxu1 %vm2822_vm6, %v2350_v24  ;;  %2205 = vmatprep.subr.msk.bf16.mxu0 %vm2910_vm13, %v2350_v24  ;;  %vm3112_vm14 = vmmov %vm3110_vm1 }
 0x230   : > { %2152 = vmatmul.mubr.msk.f32.vlgmr.msra.gmra.mrb[24].mxu1 %vm3108_vm4, %v1270_v7  ;;  %2207 = vmatpush1.bf16.msk.msra.mxu0 %vm2925_vm3, %v2350_v24  ;;  %vm3113_vm4 = vmmov %vm3110_vm1 }
 0x231   : > { %2225 = vmatprep.subr.msk.bf16.mxu0 %vm2851_vm2, %v2350_v24 }
 0x233   : > { %1949 = vmatmul.mubr.msk.f32.vlgmr.msra.gmra.mrb[16].mxu0 %vm3109_vm9, %v2600_v10  ;;  %vm2356_vm9 = vmmov (!%p1991_p5), 0  }
 0x234   : > { %2227 = vmatpush1.bf16.msk.msra.mxu0 %vm2859_vm5, %v2350_v24  ;;  %1166 = vmatprep.mubr.f32.mxu0 %v2348_v2 }
 0x235   : > { %2229 = vmatprep.subr.msk.bf16.mxu0 %vm2867_vm7, %v2350_v24 }
 0x237   : > { %1950 = vmatmul.mubr.msk.f32.gmra.mrb[18].mxu0 %vm3110_vm1, %v1080_v9  ;;  %v3120_v9 = vmax.f32 %v2538_v47, 0.0  ;;  %v3123_v47 = vmax.f32 %v2566_v62, 0.0  ;;  %vm3125_vm1 = vnez (!%p1991_p5), %v3089_v32 }
 0x238   : > { %2231 = vmatpush1.bf16.msk.msra.mxu0 %vm2882_vm15, %v2350_v24  ;;  %1172 = vmatprep.mubr.f32.mxu0 %v2348_v2 }
 0x239   : > { %2233 = vmatprep.subr.msk.bf16.mxu0 %vm2889_vm0, %v2350_v24 }
 0x23b   : > { %1951 = vmatmul.mubr.msk.f32.gmra.mrb[20].mxu0 %vm3111_vm10, %v1081_v14  ;;  %vm1628_vm10 = vcmask (!%p1991_p5), 516096  }
 0x23c   : > { %2235 = vmatpush1.bf16.msk.msra.mxu0 %vm2903_vm11, %v2350_v24  ;;  %1178 = vmatprep.mubr.f32.mxu0 %v2348_v2 }
 0x23d   : > { %2237 = vmatprep.subr.msk.bf16.mxu0 %vm2910_vm13, %v2350_v24 }
 0x23f   : > { %1952 = vmatmul.mubr.msk.f32.gmra.mrb[22].mxu0 %vm3112_vm14, %v1082_v33 }
 0x240   : > { %2239 = vmatpush1.bf16.msk.msra.mxu0 %vm2925_vm3, %v2350_v24  ;;  %1344 = vmatprep.mubr.f32.mxu0 %v2348_v2  ;;  %v3116_v2 = vmax.f32 %v2530_v40, 0.0 }
 0x243   : > { %1981 = vmatmul.mubr.msk.f32.vlgmr.msra.gmra.mrb[24].mxu0 %vm3113_vm4, %v1270_v7 }
 0x2f3   : > { %v2131_v1 = vpop.f32.mrb[20].mxu1 }
 0x2f4   : > { %v1432_v4 = vsub.f32 %v2131_v1, %v578_v31  ;;  %v1251_v10 = vpop.f32.mrb[21].mxu1 }
 0x2f5   : > { %v1429_v15 = vsub.f32 %v1251_v10, %v3114_v25 }
 0x2f6   : > { %v1444_v21 = vmul.f32 %v1432_v4, %v1432_v4  ;;  %v3121_v4 = vmax.f32 %v2564_v61, 0.0 }
 0x2f7   : > { %v1441_v6 = vmul.f32 %v1429_v15, %v1429_v15  ;;  %v2134_v3 = vpop.f32.mrb[22].mxu1  ;;  %v3122_v15 = vmax.f32 %v2562_v59, 0.0 }
 0x2f8   : > { %v1261_v23 = vpop.f32.mrb[23].mxu1  ;;  %v1438_v63 = vsub.f32 %v2134_v3, %v3115_v17 }
 0x2f9   : > { %v1469_v41 = vadd.f32 %v1444_v21, %v1441_v6  ;;  %v1435_v38 = vsub.f32 %v1261_v23, %v3116_v2  ;;  %v3124_v2 = vmax.f32 %v2568_v0, 0.0 }
 0x2fa   : > { %v1450_v45 = vmul.f32 %v1438_v63, %v1438_v63 }
 0x2fb   : > { %v1447_v48 = vmul.f32 %v1435_v38, %v1435_v38 }
 0x2fd   : > { %v1470_v27 = vadd.f32 %v1469_v41, %v1447_v48 }
 0x2ff   : > { %v1471_v31 = vadd.f32 %v1470_v27, %v1450_v45 }
 0x301   : > { %v1472_v22 = vrot.slane %v1471_v31, 4 }
 0x303   : > { %v1473_v29 = vadd.f32 %v1472_v22, %v1471_v31  ;;  %v1417_v20 = vpop.f32.mrb[24].mxu1 }
 0x304   : > { %v1418_v36 = vadd.f32 %v1417_v20, %v1275_v16  ;;  %v2153_v12 = vpop.f32.mrb[25].mxu1 }
 0x305   : > { %v1474_v24 = vrot.slane %v1473_v29, 2 }
 0x306   : > { %1426 = vst [vmem:[%s2980_s25 + $0x8] sm:$0xf] %v1418_v36  ;;  %v1162_v40 = vpop.f32.mrb[16].mxu0 }
 0x307   : > { %v1475_v52 = vadd.f32 %v1474_v24, %v1473_v29  ;;  %v1164_v19 = vpop.f32.mrb[17].mxu0  ;;  %v1427_v43 = vsub.f32 %v1162_v40, %v3117_v46 }
 0x308   : > { %v1428_v50 = vsub.f32 %v1164_v19, %v3118_v49 }
 0x309   : > { %v1476_v57 = vrot.slane %v1475_v52, 1  ;;  %v1439_v14 = vmul.f32 %v1427_v43, %v1427_v43 }
 0x30a   : > { %v1168_v34 = vpop.f32.mrb[18].mxu0  ;;  %v1440_v33 = vmul.f32 %v1428_v50, %v1428_v50  ;;  %v2353_v50 = vmov (!%p1991_p5), 1.0|1.0  }
 0x30b   : > { %v2987_v13 = vadd.f32 %v1476_v57, %v1475_v52  ;;  %v1430_v30 = vsub.f32 %v1168_v34, %v3119_v8  ;;  %v1170_v58 = vpop.f32.mrb[19].mxu0  ;;  %2253 = vmatprep.subr.msk.bf16.mxu1 (!%p1991_p5), %vm2851_vm2, %v2353_v50 }
 0x30c   : > { %v1431_v35 = vsub.f32 %v1170_v58, %v3120_v9  ;;  %2255 = vmatpush1.bf16.xpose.msk.msra.mxu1 (!%p1991_p5), %vm2859_vm5, %v2353_v50  ;;  %v2357_v58 = vmov (!%p1991_p5), 0.0  }
 0x30d   : > { %v1442_v51 = vmul.f32 %v1430_v30, %v1430_v30  ;;  %2257 = vmatprep.subr.msk.bf16.mxu1 (!%p1991_p5), %vm2867_vm7, %v2353_v50  ;;  %v2355_v30 = vmov (!%p1991_p5), 1.0   ;;  %2170 = vmatprep.mubr.msk.f32.mxu0 (!%p1991_p5), %vm2356_vm9, %v2357_v58 }
 0x30e   : > { %v1443_v7 = vmul.f32 %v1431_v35, %v1431_v35  ;;  %v1174_v1 = vpop.f32.mrb[20].mxu0  ;;  %1546 = vmatprep.mubr.f32.mxu1 (!%p1991_p5), %v2355_v30 }
 0x30f   : > { %v1451_v42 = vadd.f32 %v1442_v51, %v1439_v14  ;;  %v1433_v39 = vsub.f32 %v1174_v1, %v3121_v4  ;;  %v1176_v10 = vpop.f32.mrb[21].mxu0 }
 0x310   : > { %v1460_v25 = vadd.f32 %v1443_v7, %v1440_v33  ;;  %v1434_v21 = vsub.f32 %v1176_v10, %v3122_v15 }
 0x311   : > { %v1445_v44 = vmul.f32 %v1433_v39, %v1433_v39 }
 0x312   : > { %v1446_v6 = vmul.f32 %v1434_v21, %v1434_v21  ;;  %v1180_v3 = vpop.f32.mrb[22].mxu0 }
 0x313   : > { %v1452_v23 = vadd.f32 %v1451_v42, %v1445_v44  ;;  %v1436_v41 = vsub.f32 %v1180_v3, %v3123_v47  ;;  %v1182_v17 = vpop.f32.mrb[23].mxu0 }
 0x314   : > { %v1461_v63 = vadd.f32 %v1460_v25, %v1446_v6  ;;  %v1437_v38 = vsub.f32 %v1182_v17, %v3124_v2  ;;  %2259 = vmatpush1.bf16.xpose.msk.msra.mxu1 (!%p1991_p5), %vm2882_vm15, %v2353_v50 }
 0x315   : > { %v1448_v61 = vmul.f32 %v1436_v41, %v1436_v41  ;;  %2261 = vmatprep.subr.msk.bf16.mxu1 (!%p1991_p5), %vm2889_vm0, %v2353_v50 }
 0x316   : > { %v1449_v48 = vmul.f32 %v1437_v38, %v1437_v38  ;;  %v1346_v45 = vpop.f32.mrb[24].mxu0 }
 0x317   : > { %v1453_v27 = vadd.f32 %v1452_v23, %v1448_v61  ;;  %v1347_v31 = vadd.f32 %v1346_v45, %v1275_v16  ;;  %v1348_v59 = vpop.f32.mrb[25].mxu0 }
 0x318   : > { %v1462_v22 = vadd.f32 %v1461_v63, %v1449_v48  ;;  %v1349_v29 = vadd.f32 %v1348_v59, %v1275_v16  ;;  %v2354_v16 = vmov (!%p1991_p5), 0.0|0.0  }
 0x319   : > { %v1454_v20 = vrot.slane %v1453_v27, 4  ;;  %2268 = vmatprep.subr.bf16.mxu0 (!%p1991_p5), %v2354_v16 }
 0x31a   : > { %v1463_v36 = vrot.slane %v1462_v22, 4  ;;  %v1423_v12 = vcombine.low %v1347_v31, %v1349_v29  ;;  %2270 = vmatpush3.bf16.xpose.msk.msra.mxu0 (!%p1991_p5), %vm2775_vm8, %v2353_v50 }
 0x31b   : > { %v1455_v24 = vadd.f32 %v1454_v20, %v1453_v27  ;;  %2271 = vmatprep.subr.bf16.mxu0 (!%p1991_p5), %v2354_v16 }
 0x31c   : > { %v1464_v62 = vadd.f32 %v1463_v36, %v1462_v22  ;;  %1425 = vst [vmem:[%s2980_s25] sm:$0xff] %v1423_v12  ;;  %2263 = vmatpush1.bf16.xpose.msk.msra.mxu1 (!%p1991_p5), %vm2903_vm11, %v2353_v50 }
 0x31d   : > { %v1456_v40 = vrot.slane %v1455_v24, 2  ;;  %2265 = vmatprep.subr.msk.bf16.mxu1 (!%p1991_p5), %vm2910_vm13, %v2353_v50 }
 0x31e   : > { %v1465_v52 = vrot.slane %v1464_v62, 2  ;;  %1481 = sbr.rel (%p1991_p5) target bundleno = 1040 (0x410), region = 56 }
 0x31f   : > { %v1457_v19 = vadd.f32 %v1456_v40, %v1455_v24 }
 0x320   : > { %v1466_v57 = vadd.f32 %v1465_v52, %v1464_v62 }
 0x321   : > { %v1458_v0 = vrot.slane %v1457_v19, 1 }
 0x322   : > { %v1467_v46 = vrot.slane %v1466_v57, 1  ;;  %2273 = vmatpush3.bf16.xpose.msk.msra.mxu0 (!%p1991_p5), %vm2794_vm12, %v2353_v50 }
 0x323   : > { %v1459_v43 = vadd.f32 %v1458_v0, %v1457_v19  ;;  %2274 = vmatprep.subr.bf16.mxu0 (!%p1991_p5), %v2354_v16 }
 0x324   : > { %v1468_v49 = vadd.f32 %v1467_v46, %v1466_v57  ;;  %2267 = vmatpush1.bf16.xpose.msk.msra.mxu1 (!%p1991_p5), %vm2925_vm3, %v2353_v50 }
 0x326   : > { %v1622_v34 = vadd.f32 %v1468_v49, %v1459_v43 }
 0x328   : > { %v1623_v8 = vadd.f32 %v1622_v34, %v2987_v13 }
 0x32a   : > { %1624 = vadd.xlane.f32.xlu0 %v1623_v8  ;;  %2276 = vmatpush3.bf16.xpose.msk.msra.mxu0 %vm3125_vm1, %v2353_v50 }
 0x32b   : > { %2277 = vmatprep.subr.bf16.mxu0 %v2354_v16  ;;  %1547 = vmatmul.mubr.f32.vlgmr.msra.gmra.mrb[0].mxu1 %v2355_v30 }
 0x332   : > { %2279 = vmatpush3.bf16.xpose.msk.msra.mxu0 %vm2822_vm6, %v2353_v50 }
 0x339   : > { %2171 = vmatmul.mubr.f32.vlgmr.msra.gmra.mrb[0].mxu0 %v2355_v30 }
 0x3b7   : > { %v1625_v9 = vpop.xlane.xlu0 %1624 }
 0x3b8   : > { %1627 = vst [vmem:[%s2447_s23] sm:$0x1] %v1625_v9 }
 0x3fe   : > { %v1548_v35 = vpop.f32.mrb[0].mxu1 }
 0x3ff   : > { %v1550_v33 = vpop.f32.mrb[1].mxu1 }
 0x40c   : > { %v1618_v14 = vpop.f32.mrb[0].mxu0 }
 0x40d   : > { %v1619_v51 = vadd.f32 %v1618_v14, %v1548_v35  ;;  %v2172_v7 = vpop.f32.mrb[1].mxu0 }
 0x40f   : > { %1629 = vst.msk [vmem:[%s2447_s23] sm:$0x1] %vm1628_vm10, %v1619_v51 }
 0x410 PF: > { %p2016_p6 = scmp.ne.s32.totalorder %s2419_s10, 1 }
 0x411   : > { %v2358_v1 = vmov (!%p2016_p6), 1.0|1.0   ;;  %v2359_v42 = vmov (!%p2016_p6), 0.0|0.0   ;;  %v1788_v4 = vmul.f32 (!%p2016_p6), 0.0, %v1468_v49  ;;  %v1789_v39 = vmul.f32 (!%p2016_p6), 0.0, %v2987_v13 }
 0x412   : > { %1633 = sbr.rel (%p2016_p6) target bundleno = 1289 (0x509), region = 60  ;;  %2281 = vmatprep.subr.msk.bf16.mxu1 (!%p2016_p6), %vm2851_vm2, %v2358_v1  ;;  %2296 = vmatprep.subr.bf16.mxu0 (!%p2016_p6), %v2359_v42  ;;  %v2360_v25 = vmov (!%p2016_p6), 0.0   ;;  %vm2361_vm14 = vmmov (!%p2016_p6), 0   ;;  %v2362_v54 = vmov (!%p2016_p6), 1.0  }
 0x413   : > { %2283 = vmatpush1.bf16.xpose.msk.msra.mxu1 (!%p2016_p6), %vm2859_vm5, %v2358_v1  ;;  %2298 = vmatpush3.bf16.xpose.msk.msra.mxu0 (!%p2016_p6), %vm2775_vm8, %v2358_v1  ;;  %v1790_v10 = vadd.f32 (!%p2016_p6), %v1788_v4, %v1459_v43  ;;  %vm3126_vm8 = vnez (!%p2016_p6), %v3089_v32 }
 0x414   : > { %2285 = vmatprep.subr.msk.bf16.mxu1 (!%p2016_p6), %vm2867_vm7, %v2358_v1  ;;  %2299 = vmatprep.subr.bf16.mxu0 (!%p2016_p6), %v2359_v42 }
 0x415   : > { %1711 = vmatprep.mubr.f32.mxu1 (!%p2016_p6), %v2360_v25  ;;  %2189 = vmatprep.mubr.msk.f32.mxu0 (!%p2016_p6), %vm2361_vm14, %v2360_v25  ;;  %v1791_v60 = vadd.f32 (!%p2016_p6), %v1790_v10, %v1789_v39 }
 0x417   : > { %1792 = vadd.xlane.f32.xlu0 (!%p2016_p6), %v1791_v60 }
 0x41b   : > { %2287 = vmatpush1.bf16.xpose.msk.msra.mxu1 %vm2882_vm15, %v2358_v1  ;;  %2301 = vmatpush3.bf16.xpose.msk.msra.mxu0 %vm2794_vm12, %v2358_v1  ;;  %vm1796_vm12 = vcmask 516096  }
 0x41c   : > { %2289 = vmatprep.subr.msk.bf16.mxu1 %vm2889_vm0, %v2358_v1  ;;  %2302 = vmatprep.subr.bf16.mxu0 %v2359_v42 }
 0x423   : > { %2291 = vmatpush1.bf16.xpose.msk.msra.mxu1 %vm2903_vm11, %v2358_v1  ;;  %2304 = vmatpush3.bf16.xpose.msk.msra.mxu0 %vm3126_vm8, %v2358_v1 }
 0x424   : > { %2293 = vmatprep.subr.msk.bf16.mxu1 %vm2910_vm13, %v2358_v1  ;;  %2305 = vmatprep.subr.bf16.mxu0 %v2359_v42 }
 0x42b   : > { %2295 = vmatpush1.bf16.xpose.msk.msra.mxu1 %vm2925_vm3, %v2358_v1  ;;  %2307 = vmatpush3.bf16.xpose.msk.msra.mxu0 %vm2822_vm6, %v2358_v1 }
 0x432   : > { %1712 = vmatmul.mubr.f32.vlgmr.msra.gmra.mrb[0].mxu1 %v2362_v54  ;;  %2190 = vmatmul.mubr.f32.vlgmr.msra.gmra.mrb[0].mxu0 %v2360_v25 }
 0x4a4   : > { %v1793_v53 = vpop.xlane.xlu0 %1792 }
 0x4a5   : > { %1795 = vst [vmem:[%s2447_s23] sm:$0x1] %v1793_v53 }
 0x505   : > { %v1713_v28 = vpop.f32.mrb[0].mxu1  ;;  %v1783_v56 = vpop.f32.mrb[0].mxu0 }
 0x506   : > { %v1784_v32 = vadd.f32 %v1783_v56, %v1713_v28  ;;  %v1715_v55 = vpop.f32.mrb[1].mxu1  ;;  %v2191_v26 = vpop.f32.mrb[1].mxu0 }
 0x508   : > { %1797 = vst.msk [vmem:[%s2447_s23] sm:$0x1] %vm1796_vm12, %v1784_v32 }
 0x509 PF: > { %s20_s30 = sadd.s32 1, %s2346_s30  }
 0x50a   : > { %p17_p7 = scmp.ge.s32.totalorder %s20_s30, 4  }
 0x50c   :  { %19 = sbr.rel (!%p17_p7) target bundleno = 1 (0x1), region = 102 }

</bundles_post_ra>
